<compile_context>
chip_gen: v7x
topology: tpu7x:2x2x1
jax: 0.10.0
libtpu: 0.0.40
codegen_flags: <defaults>
</compile_context>

<pallas_src>
import functools
import math

import jax
import jax.numpy as jnp
from jax import lax
from jax.experimental import pallas as pl
from jax.experimental.pallas import tpu as pltpu


def _round_up(x, m):
    return (x + m - 1) // m * m


# ---------------------------------------------------------------------------
# Kernel 1: hoisted key-side projections, gridded over source-row tiles.
#   K        = x @ WK_x + pe_K @ WK_pe + Kb                        -> [N, hid]
#   V_tilde  = x @ (WV folded with lin_w, head-major, hid padded)  -> [N, H*hid_pad]
# ---------------------------------------------------------------------------
def _kv_project_kernel(x_ref, pek_ref, wkx_ref, wkpe_ref, kb_ref,
                       wvt_ref, vbt_ref, k_out_ref, vt_out_ref, *, use_bf16):
    f32 = jnp.float32
    cdt = jnp.bfloat16 if use_bf16 else jnp.float32
    x = x_ref[...].astype(cdt)
    pe = pek_ref[...].astype(cdt)
    k = (jnp.dot(x, wkx_ref[...], preferred_element_type=f32)
         + jnp.dot(pe, wkpe_ref[...], preferred_element_type=f32)
         + kb_ref[...])
    vt = jnp.dot(x, wvt_ref[...], preferred_element_type=f32) + vbt_ref[...]
    k_out_ref[...] = k.astype(k_out_ref.dtype)
    vt_out_ref[...] = vt.astype(vt_out_ref.dtype)


# ---------------------------------------------------------------------------
# Kernel 2 (main, fused): Q projection + flash-style online-softmax attention over
# key tiles + lin (folded) + deg-scaled residual + LN1 + FFN(ReLU) + residual + LN2.
# Grid = (query-row tiles ["parallel"], key tiles ["arbitrary"]).
# ---------------------------------------------------------------------------
def _gt_layer_kernel(x_ref, peq_ref, deg_ref, k_ref, vt_ref,
                     wqx_ref, wqpe_ref, qb_ref,
                     linb_ref, ln1g_ref, ln1b_ref,
                     w1_ref, b1_ref, w2_ref, b2_ref, ln2g_ref, ln2b_ref,
                     out_ref, q_sc, m_sc, l_sc, acc_sc,
                     *, heads, d_h, hid_dim, hid_pad, n_keys, key_tile,
                     mask_keys, use_bf16, bf16_softmax, approx_recip):
    f32 = jnp.float32
    cdt = jnp.bfloat16 if use_bf16 else jnp.float32      # MXU operand dtype
    edt = jnp.bfloat16 if bf16_softmax else jnp.float32  # exp dtype (bf16 EUP on v6e/v7x)
    eps = 1e-5
    neg_big = jnp.float32(-1e30)

    ki = pl.program_id(1)
    nk = pl.num_programs(1)

    # ---- once per query-row tile: Q projection (1/sqrt(hid) folded) + state init ----
    @pl.when(ki == 0)
    def _init():
        xq = x_ref[...].astype(cdt)                    # [tq, hid_pad] (zero-padded cols)
        pe = peq_ref[...].astype(cdt)                  # [tq, pe_dim]
        q = (jnp.dot(xq, wqx_ref[...], preferred_element_type=f32)
             + jnp.dot(pe, wqpe_ref[...], preferred_element_type=f32)
             + qb_ref[...])
        q_sc[...] = q * (1.0 / math.sqrt(hid_dim))
        m_sc[...] = jnp.full(m_sc.shape, neg_big, f32)
        l_sc[...] = jnp.zeros(l_sc.shape, f32)
        acc_sc[...] = jnp.zeros(acc_sc.shape, f32)

    # ---- online-softmax accumulation over this key tile, all heads ----
    q = q_sc[...]                                      # [tq, hid] f32
    k = k_ref[...].astype(cdt)                         # [tk, hid]
    dims = (((1,), (1,)), ((), ()))                    # contract last dims: q @ k.T
    if mask_keys:
        col = ki * key_tile + lax.broadcasted_iota(jnp.int32,
                                                   (q.shape[0], key_tile), 1)
        key_ok = col < n_keys
    # TODO(synk): heads loop is unrolled; if bundle dumps show vreg spills at large
    #             tq*tk, move heads onto a trailing "arbitrary" grid axis instead.
    for h in range(heads):
        hs = slice(h * d_h, (h + 1) * d_h)
        s = lax.dot_general(q[:, hs].astype(cdt), k[:, hs], dims,
                            preferred_element_type=f32)              # [tq, tk]
        if mask_keys:
            s = jnp.where(key_ok, s, neg_big)
        m_prev = m_sc[h]                                              # [tq, 1]
        m_new = jnp.maximum(m_prev, jnp.max(s, axis=-1, keepdims=True))
        alpha = jnp.exp(m_prev - m_new)
        p = jnp.exp((s - m_new).astype(edt))
        l_sc[h] = alpha * l_sc[h] + jnp.sum(p, axis=-1, keepdims=True, dtype=f32)
        vt_h = vt_ref[:, h * hid_pad:(h + 1) * hid_pad].astype(cdt)   # [tk, hid_pad]
        acc_sc[h] = alpha * acc_sc[h] + jnp.dot(p.astype(cdt), vt_h,
                                                preferred_element_type=f32)
        m_sc[h] = m_new

    # ---- once per query-row tile (last key tile): normalize + fused epilogue ----
    @pl.when(ki == nk - 1)
    def _finalize():
        attn = linb_ref[...]                            # [1, hid_pad] lin bias
        for h in range(heads):
            # deferred softmax normalization: hid-wide multiply instead of N-wide
            attn = attn + acc_sc[h] * pl.reciprocal(l_sc[h], approx=approx_recip)
        x1 = x_ref[...] + attn * lax.rsqrt(deg_ref[...])
        # LayerNorm over the REAL hid_dim lanes; padded lanes are exactly zero, so
        # sum/hid and E[x^2]-mu^2 reproduce the unpadded statistics.
        inv_w = 1.0 / hid_dim
        mu = jnp.sum(x1, axis=-1, keepdims=True) * inv_w
        var = jnp.sum(x1 * x1, axis=-1, keepdims=True) * inv_w - mu * mu
        x1 = (x1 - mu) * lax.rsqrt(var + eps) * ln1g_ref[...] + ln1b_ref[...]
        h1 = jnp.dot(x1.astype(cdt), w1_ref[...],
                     preferred_element_type=f32) + b1_ref[...]
        h1 = jnp.maximum(h1, 0.0)
        # TODO(synk): F.dropout omitted (inference / deterministic kernel).
        h2 = jnp.dot(h1.astype(cdt), w2_ref[...],
                     preferred_element_type=f32) + b2_ref[...]
        x2 = x1 + h2
        mu2 = jnp.sum(x2, axis=-1, keepdims=True) * inv_w
        var2 = jnp.sum(x2 * x2, axis=-1, keepdims=True) * inv_w - mu2 * mu2
        out_ref[...] = ((x2 - mu2) * lax.rsqrt(var2 + eps) * ln2g_ref[...]
                        + ln2b_ref[...]).astype(out_ref.dtype)


# ---------------------------------------------------------------------------
# Wrapper: weight-side preprocessing (widen / fold / pad), padding, specs, calls.
# ---------------------------------------------------------------------------
def graph_transformer_layer(x, pe_Q, pe_K, deg, params, *, hid_dim, heads,
                            use_bf16=True, bf16_softmax=None,
                            approx_reciprocal=False, q_tile=None, k_tile=None):
    f32 = jnp.float32
    n, in_dim = x.shape
    pe_dim = pe_Q.shape[1]
    d_h = hid_dim // heads
    if in_dim != hid_dim:
        raise ValueError("residual x + attn requires in_dim == hid_dim "
                         "(as in the PyTorch module)")
    if bf16_softmax is None:
        # bf16 exp only helps on chips with a bf16 EUP (v6e/v7x); set False on v5e.
        bf16_softmax = use_bf16

    # Lane-dense hid: pad to a multiple of 128 so stores / MXU output columns are full.
    hid_pad = _round_up(hid_dim, 128)

    # Chip-aware VMEM budget / tile sizes (v5e/v6e: 128 MiB phys, v7x: 64 MiB).
    vmem_cap = 64 * 1024 * 1024
    try:
        vmem_cap = int(pltpu.get_tpu_info().vmem_capacity_bytes)
    except Exception:
        pass
    vmem_limit = min(100 * 1024 * 1024, (vmem_cap * 3) // 4)
    if q_tile is None:
        q_tile = 512 if vmem_cap >= 128 * 1024 * 1024 else 256
    if k_tile is None:
        k_tile = 512

    wdt = jnp.bfloat16 if use_bf16 else jnp.float32   # MXU-operand / K,VT storage dtype

    # ---- weight-side preprocessing (pure weight math, negligible cost) ----
    def widen(w):        # [H, F, d_h] -> [F, H*d_h], head-major columns
        return jnp.transpose(w, (1, 0, 2)).reshape(w.shape[1], heads * d_h)

    def widen_bias(b):   # [H, 1, d_h] -> [1, H*d_h]
        return jnp.transpose(b, (1, 0, 2)).reshape(1, heads * d_h)

    wq = widen(params["WQ"])
    wk = widen(params["WK"])
    qb = widen_bias(params["Qb"]).astype(f32)
    kb = widen_bias(params["Kb"]).astype(f32)
    # No x_Q / x_K concat in HBM: split the projections into x- and pe- parts.
    wq_x, wq_pe = wq[:in_dim], wq[in_dim:]
    wk_x, wk_pe = wk[:in_dim], wk[in_dim:]
    # The main kernel streams x padded to hid_pad columns; pad wq_x rows to match.
    wq_x = jnp.pad(wq_x, ((0, hid_pad - in_dim), (0, 0)))

    # Fold lin into V (head-major), hid padded to lane-dense hid_pad columns.
    lin_w_p = jnp.pad(params["lin_w"], ((0, 0), (0, hid_pad - hid_dim)))
    lin_w_h = lin_w_p.reshape(heads, d_h, hid_pad)
    wv_t = jnp.einsum("hik,hkp->hip", params["WV"], lin_w_h)      # [H, in_dim, hid_pad]
    wv_t = jnp.transpose(wv_t, (1, 0, 2)).reshape(in_dim, heads * hid_pad)
    vb_t = jnp.einsum("hok,hkp->hop", params["Vb"], lin_w_h)      # [H, 1, hid_pad]
    vb_t = jnp.transpose(vb_t, (1, 0, 2)).reshape(1, heads * hid_pad).astype(f32)

    def pad_cols(a):
        return jnp.pad(a, ((0, 0), (0, hid_pad - hid_dim)))

    lin_b_p = pad_cols(params["lin_b"]).astype(f32)
    ln1_g_p, ln1_b_p = pad_cols(params["ln1_g"]), pad_cols(params["ln1_b"])
    ln2_g_p, ln2_b_p = pad_cols(params["ln2_g"]), pad_cols(params["ln2_b"])
    pad_hw = hid_pad - hid_dim
    w1_p = jnp.pad(params["w1"], ((0, pad_hw), (0, pad_hw)))
    w2_p = jnp.pad(params["w2"], ((0, pad_hw), (0, pad_hw)))
    b1_p = pad_cols(params["b1"]).astype(f32)
    b2_p = pad_cols(params["b2"]).astype(f32)

    # ---- activation padding (rows to tile multiples, hid columns to hid_pad) ----
    tq = min(q_tile, _round_up(n, 8))
    n_q = _round_up(n, tq)
    tk = min(k_tile, _round_up(n, 8))
    n_k = _round_up(n, tk)
    mask_keys = n_k > n

    x_q_rows = jnp.pad(x, ((0, n_q - n), (0, hid_pad - in_dim)))
    pe_q_rows = jnp.pad(pe_Q, ((0, n_q - n), (0, 0)))
    deg_col = jnp.pad(deg.reshape(-1, 1).astype(f32), ((0, n_q - n), (0, 0)),
                      constant_values=1.0)
    x_k_rows = jnp.pad(x, ((0, n_k - n), (0, 0)))
    pe_k_rows = jnp.pad(pe_K, ((0, n_k - n), (0, 0)))

    # ---- kernel 1: hoisted K / V_tilde projection (runs once, outside the row grid) ----
    kv_kernel = functools.partial(_kv_project_kernel, use_bf16=use_bf16)
    k_mat, vt_mat = pl.pallas_call(
        kv_kernel,
        out_shape=(jax.ShapeDtypeStruct((n_k, hid_dim), wdt),
                   jax.ShapeDtypeStruct((n_k, heads * hid_pad), wdt)),
        grid=(n_k // tk,),
        in_specs=[pl.BlockSpec((tk, in_dim), lambda i: (i, 0)),
                  pl.BlockSpec((tk, pe_dim), lambda i: (i, 0)),
                  pl.BlockSpec(wk_x.shape, lambda i: (0, 0)),
                  pl.BlockSpec(wk_pe.shape, lambda i: (0, 0)),
                  pl.BlockSpec(kb.shape, lambda i: (0, 0)),
                  pl.BlockSpec(wv_t.shape, lambda i: (0, 0)),
                  pl.BlockSpec(vb_t.shape, lambda i: (0, 0))],
        out_specs=(pl.BlockSpec((tk, hid_dim), lambda i: (i, 0)),
                   pl.BlockSpec((tk, heads * hid_pad), lambda i: (i, 0))),
        compiler_params=pltpu.CompilerParams(
            dimension_semantics=("parallel",), vmem_limit_bytes=vmem_limit),
    )(x_k_rows, pe_k_rows, wk_x.astype(wdt), wk_pe.astype(wdt), kb,
      wv_t.astype(wdt), vb_t)

    # ---- kernel 2: fused attention + epilogue over (row tiles, key tiles) ----
    kernel = functools.partial(
        _gt_layer_kernel, heads=heads, d_h=d_h, hid_dim=hid_dim, hid_pad=hid_pad,
        n_keys=n, key_tile=tk, mask_keys=mask_keys, use_bf16=use_bf16,
        bf16_softmax=bf16_softmax, approx_recip=approx_reciprocal)

    row_ins = (x_q_rows, pe_q_rows, deg_col, k_mat, vt_mat)
    const_ins = (wq_x.astype(wdt), wq_pe.astype(wdt), qb,
                 lin_b_p, ln1_g_p, ln1_b_p,
                 w1_p.astype(wdt), b1_p, w2_p.astype(wdt), b2_p,
                 ln2_g_p, ln2_b_p)

    cost = pl.CostEstimate(
        flops=int(2 * n_q * (hid_pad + pe_dim) * hid_dim
                  + 2 * heads * n_q * n_k * (d_h + hid_pad)
                  + 4 * n_q * hid_pad * hid_pad),
        transcendentals=int(heads * n_q * n_k),
        bytes_accessed=int(sum(a.size * a.dtype.itemsize for a in row_ins + const_ins)
                           + n_q * hid_pad * 4))

    def _call(buffered):
        def const_spec(shape):
            if buffered:
                # constant-index blocks never change: single-buffer them
                return pl.BlockSpec(shape, lambda qi, ki: (0, 0),
                                    pipeline_mode=pl.Buffered(1))
            return pl.BlockSpec(shape, lambda qi, ki: (0, 0))

        in_specs = [
            pl.BlockSpec((tq, hid_pad), lambda qi, ki: (qi, 0)),          # x rows
            pl.BlockSpec((tq, pe_dim), lambda qi, ki: (qi, 0)),           # pe_Q rows
            pl.BlockSpec((tq, 1), lambda qi, ki: (qi, 0)),                # deg rows
            pl.BlockSpec((tk, hid_dim), lambda qi, ki: (ki, 0)),          # K tile
            pl.BlockSpec((tk, heads * hid_pad), lambda qi, ki: (ki, 0)),  # V_tilde tile
        ] + [const_spec(a.shape) for a in const_ins]

        return pl.pallas_call(
            kernel,
            out_shape=jax.ShapeDtypeStruct((n_q, hid_pad), f32),
            grid=(n_q // tq, n_k // tk),
            in_specs=in_specs,
            out_specs=pl.BlockSpec((tq, hid_pad), lambda qi, ki: (qi, 0)),
            scratch_shapes=[pltpu.VMEM((tq, hid_dim), f32),          # scaled Q
                            pltpu.VMEM((heads, tq, 1), f32),         # running max
                            pltpu.VMEM((heads, tq, 1), f32),         # running denom
                            pltpu.VMEM((heads, tq, hid_pad), f32)],  # running P@V~ acc
            compiler_params=pltpu.CompilerParams(
                dimension_semantics=("parallel", "arbitrary"),
                vmem_limit_bytes=vmem_limit),
            cost_estimate=cost,
        )(*row_ins, *const_ins)

    use_buffered = hasattr(pl, "Buffered")
    try:
        out = jax.block_until_ready(_call(use_buffered))
    except Exception:
        if not use_buffered:
            raise
        out = _call(False)   # pl.Buffered(1) unsupported on this jax/libtpu: fall back

    return out[:n, :hid_dim]


# ---------------------------------------------------------------------------
# Deterministic parameter init (shapes from the module __init__)
# ---------------------------------------------------------------------------
def init_params(key, in_dim, hid_dim, num_edge_types, heads):
    d_h = hid_dim // heads
    d_qk = (num_edge_types + 1) * hid_dim
    ks = jax.random.split(key, 8)

    def glorot(k, shape):
        bound = math.sqrt(6.0 / (shape[-2] + shape[-1]))
        return jax.random.uniform(k, shape, jnp.float32, -bound, bound)

    def lin(k, fan_in, fan_out):
        kw, kb = jax.random.split(k)
        bound = 1.0 / math.sqrt(fan_in)
        w = jax.random.uniform(kw, (fan_in, fan_out), jnp.float32, -bound, bound)
        b = jax.random.uniform(kb, (1, fan_out), jnp.float32, -bound, bound)
        return w, b

    lin_w, lin_b = lin(ks[3], hid_dim, hid_dim)
    w1, b1 = lin(ks[4], hid_dim, hid_dim)
    w2, b2 = lin(ks[5], hid_dim, hid_dim)
    return {
        "WQ": glorot(ks[0], (heads, d_qk, d_h)),
        "WK": glorot(ks[1], (heads, d_qk, d_h)),
        "WV": glorot(ks[2], (heads, in_dim, d_h)),
        "Qb": jnp.zeros((heads, 1, d_h), jnp.float32),
        "Kb": jnp.zeros((heads, 1, d_h), jnp.float32),
        "Vb": jnp.zeros((heads, 1, d_h), jnp.float32),
        "lin_w": lin_w, "lin_b": lin_b,
        "ln1_g": jnp.ones((1, hid_dim), jnp.float32),
        "ln1_b": jnp.zeros((1, hid_dim), jnp.float32),
        "w1": w1, "b1": b1, "w2": w2, "b2": b2,
        "ln2_g": jnp.ones((1, hid_dim), jnp.float32),
        "ln2_b": jnp.zeros((1, hid_dim), jnp.float32),
    }


# ---------------------------------------------------------------------------
# Pure-JAX reference (mirrors the PyTorch forward, eval mode)
# ---------------------------------------------------------------------------
def reference(x, pe_Q, pe_K, deg, p, *, hid_dim):
    x_q = jnp.concatenate([x, pe_Q], axis=-1)
    x_k = jnp.concatenate([x, pe_K], axis=-1)
    Q = jnp.einsum("nd,hdk->hnk", x_q, p["WQ"]) + p["Qb"]
    K = jnp.einsum("nd,hdk->hnk", x_k, p["WK"]) + p["Kb"]
    V = jnp.einsum("nd,hdk->hnk", x, p["WV"]) + p["Vb"]
    attn = jax.nn.softmax(jnp.einsum("hqk,hvk->hqv", Q, K) / math.sqrt(hid_dim), axis=-1)
    ax = jnp.einsum("hqk,hkd->hqd", attn, V)
    ax = jnp.transpose(ax, (1, 0, 2)).reshape(x.shape[0], hid_dim)
    ax = ax @ p["lin_w"] + p["lin_b"]

    def ln(v, g, b):
        mu = v.mean(-1, keepdims=True)
        var = ((v - mu) ** 2).mean(-1, keepdims=True)
        return (v - mu) / jnp.sqrt(var + 1e-5) * g + b

    x1 = ln(x + ax / jnp.sqrt(deg).reshape(-1, 1), p["ln1_g"], p["ln1_b"])
    h = jnp.maximum(x1 @ p["w1"] + p["b1"], 0.0)
    h = h @ p["w2"] + p["b2"]
    return ln(x1 + h, p["ln2_g"], p["ln2_b"])


if __name__ == "__main__":
    N, in_dim, hid_dim, num_edge_types, heads = 8, 32, 32, 3, 4
    pe_dim = (num_edge_types + 1) * hid_dim - in_dim  # 96

    key = jax.random.PRNGKey(0)
    k_x, k_pq, k_pk, k_deg, k_p = jax.random.split(key, 5)
    x = jax.random.normal(k_x, (N, in_dim), jnp.float32)
    pe_Q = jax.random.normal(k_pq, (N, pe_dim), jnp.float32)
    pe_K = jax.random.normal(k_pk, (N, pe_dim), jnp.float32)
    deg = jax.random.uniform(k_deg, (N,), jnp.float32, 1.0, 5.0)
    params = init_params(k_p, in_dim, hid_dim, num_edge_types, heads)

    ref = reference(x, pe_Q, pe_K, deg, params, hid_dim=hid_dim)

    # Exact-precision path (f32 MXU operands, f32 exp): tight check vs the reference.
    out_f32 = graph_transformer_layer(x, pe_Q, pe_K, deg, params,
                                      hid_dim=hid_dim, heads=heads, use_bf16=False)
    out_f32 = jax.block_until_ready(out_f32)
    assert out_f32.shape == (N, hid_dim)
    assert jnp.allclose(out_f32, ref, atol=2e-3, rtol=2e-3), \
        float(jnp.max(jnp.abs(out_f32 - ref)))

    # Performance path (bf16 MXU operands + bf16 softmax exp): loose sanity check.
    out_bf16 = graph_transformer_layer(x, pe_Q, pe_K, deg, params,
                                       hid_dim=hid_dim, heads=heads, use_bf16=True)
    out_bf16 = jax.block_until_ready(out_bf16)
    assert out_bf16.shape == (N, hid_dim)
    assert jnp.allclose(out_bf16, ref, atol=2e-1, rtol=2e-1), \
        float(jnp.max(jnp.abs(out_bf16 - ref)))

    # Ragged N (not a multiple of 8): exercises row/key padding + score masking.
    N2 = 12
    k2 = jax.random.split(key, 4)
    x2 = jax.random.normal(k2[0], (N2, in_dim), jnp.float32)
    pe_Q2 = jax.random.normal(k2[1], (N2, pe_dim), jnp.float32)
    pe_K2 = jax.random.normal(k2[2], (N2, pe_dim), jnp.float32)
    deg2 = jax.random.uniform(k2[3], (N2,), jnp.float32, 1.0, 5.0)
    ref2 = reference(x2, pe_Q2, pe_K2, deg2, params, hid_dim=hid_dim)
    out2 = graph_transformer_layer(x2, pe_Q2, pe_K2, deg2, params,
                                   hid_dim=hid_dim, heads=heads, use_bf16=False)
    out2 = jax.block_until_ready(out2)
    assert out2.shape == (N2, hid_dim)
    assert jnp.allclose(out2, ref2, atol=2e-3, rtol=2e-3), \
        float(jnp.max(jnp.abs(out2 - ref2)))

    print("KERNEL_OK")
</pallas_src>

<mosaic_0001>
module attributes {stable_mosaic.version = 11 : i64} {
  func.func @_kv_project_kernel(%arg0: i32, %arg1: memref<8x32xf32, #tpu.memory_space<vmem>>, %arg2: memref<8x96xf32, #tpu.memory_space<vmem>>, %arg3: memref<32x32xf32, #tpu.memory_space<vmem>>, %arg4: memref<96x32xf32, #tpu.memory_space<vmem>>, %arg5: memref<1x32xf32, #tpu.memory_space<vmem>>, %arg6: memref<32x512xf32, #tpu.memory_space<vmem>>, %arg7: memref<1x512xf32, #tpu.memory_space<vmem>>, %arg8: memref<8x32xf32, #tpu.memory_space<vmem>>, %arg9: memref<8x512xf32, #tpu.memory_space<vmem>>) attributes {dimension_semantics = [#tpu.dimension_semantics<parallel>], iteration_bounds = array<i64: 1>, scalar_prefetch = 0 : i64, scratch_operands = 0 : i64, tpu.core_type = #tpu.core_type<tc>, window_params = [{transform_indices = @transform_0, window_bounds = array<i64: 8, 32>}, {transform_indices = @transform_1, window_bounds = array<i64: 8, 96>}, {pipeline_mode = #tpu.pipeline_mode<synchronous>, transform_indices = @transform_2, window_bounds = array<i64: 32, 32>}, {pipeline_mode = #tpu.pipeline_mode<synchronous>, transform_indices = @transform_3, window_bounds = array<i64: 96, 32>}, {pipeline_mode = #tpu.pipeline_mode<synchronous>, transform_indices = @transform_4, window_bounds = array<i64: 1, 32>}, {pipeline_mode = #tpu.pipeline_mode<synchronous>, transform_indices = @transform_5, window_bounds = array<i64: 32, 512>}, {pipeline_mode = #tpu.pipeline_mode<synchronous>, transform_indices = @transform_6, window_bounds = array<i64: 1, 512>}, {transform_indices = @transform_7, window_bounds = array<i64: 8, 32>}, {transform_indices = @transform_8, window_bounds = array<i64: 8, 512>}]} {
    %c0 = arith.constant 0 : index
    %c0_0 = arith.constant 0 : index
    %0 = vector.load %arg1[%c0, %c0_0] : memref<8x32xf32, #tpu.memory_space<vmem>>, vector<8x32xf32>
    %c0_1 = arith.constant 0 : index
    %c0_2 = arith.constant 0 : index
    %1 = vector.load %arg2[%c0_1, %c0_2] : memref<8x96xf32, #tpu.memory_space<vmem>>, vector<8x96xf32>
    %c0_3 = arith.constant 0 : index
    %c0_4 = arith.constant 0 : index
    %2 = vector.load %arg3[%c0_3, %c0_4] : memref<32x32xf32, #tpu.memory_space<vmem>>, vector<32x32xf32>
    %cst = arith.constant dense<0.000000e+00> : vector<8x32xf32>
    %3 = tpu.matmul %0, %2, %cst {dimension_numbers = #tpu.dot_dimension_numbers<[1], [0], [0], [1], [0, 0, 1, 1], [], []>} : vector<8x32xf32>, vector<32x32xf32>, vector<8x32xf32> -> vector<8x32xf32>
    %c0_5 = arith.constant 0 : index
    %c0_6 = arith.constant 0 : index
    %4 = vector.load %arg4[%c0_5, %c0_6] : memref<96x32xf32, #tpu.memory_space<vmem>>, vector<96x32xf32>
    %cst_7 = arith.constant dense<0.000000e+00> : vector<8x32xf32>
    %5 = tpu.matmul %1, %4, %cst_7 {dimension_numbers = #tpu.dot_dimension_numbers<[1], [0], [0], [1], [0, 0, 1, 1], [], []>} : vector<8x96xf32>, vector<96x32xf32>, vector<8x32xf32> -> vector<8x32xf32>
    %6 = arith.addf %3, %5 : vector<8x32xf32>
    %c0_8 = arith.constant 0 : index
    %c0_9 = arith.constant 0 : index
    %7 = vector.load %arg5[%c0_8, %c0_9] : memref<1x32xf32, #tpu.memory_space<vmem>>, vector<1x32xf32>
    %8 = vector.broadcast %7 : vector<1x32xf32> to vector<8x32xf32>
    %9 = arith.addf %6, %8 : vector<8x32xf32>
    %c0_10 = arith.constant 0 : index
    %c0_11 = arith.constant 0 : index
    %10 = vector.load %arg6[%c0_10, %c0_11] : memref<32x512xf32, #tpu.memory_space<vmem>>, vector<32x512xf32>
    %cst_12 = arith.constant dense<0.000000e+00> : vector<8x512xf32>
    %11 = tpu.matmul %0, %10, %cst_12 {dimension_numbers = #tpu.dot_dimension_numbers<[1], [0], [0], [1], [0, 0, 1, 1], [], []>} : vector<8x32xf32>, vector<32x512xf32>, vector<8x512xf32> -> vector<8x512xf32>
    %c0_13 = arith.constant 0 : index
    %c0_14 = arith.constant 0 : index
    %12 = vector.load %arg7[%c0_13, %c0_14] : memref<1x512xf32, #tpu.memory_space<vmem>>, vector<1x512xf32>
    %13 = vector.broadcast %12 : vector<1x512xf32> to vector<8x512xf32>
    %14 = arith.addf %11, %13 : vector<8x512xf32>
    %c0_15 = arith.constant 0 : index
    %c0_16 = arith.constant 0 : index
    %15 = vector.load %arg8[%c0_15, %c0_16] : memref<8x32xf32, #tpu.memory_space<vmem>>, vector<8x32xf32>
    tpu.vector_store %arg8[%c0_15, %c0_16], %9 {strides = array<i32>} : memref<8x32xf32, #tpu.memory_space<vmem>>, vector<8x32xf32>,
    %c0_17 = arith.constant 0 : index
    %c0_18 = arith.constant 0 : index
    %16 = vector.load %arg9[%c0_17, %c0_18] : memref<8x512xf32, #tpu.memory_space<vmem>>, vector<8x512xf32>
    tpu.vector_store %arg9[%c0_17, %c0_18], %14 {strides = array<i32>} : memref<8x512xf32, #tpu.memory_space<vmem>>, vector<8x512xf32>,
    return
  }
  func.func @transform_0(%arg0: i32) -> (i32, i32) {
    %c0_i32 = arith.constant 0 : i32
    %c0_i32_0 = arith.constant 0 : i32
    return %arg0, %c0_i32 : i32, i32
  }
  func.func @transform_1(%arg0: i32) -> (i32, i32) {
    %c0_i32 = arith.constant 0 : i32
    %c0_i32_0 = arith.constant 0 : i32
    return %arg0, %c0_i32 : i32, i32
  }
  func.func @transform_2(%arg0: i32) -> (i32, i32) {
    %c0_i32 = arith.constant 0 : i32
    %c0_i32_0 = arith.constant 0 : i32
    %c0_i32_1 = arith.constant 0 : i32
    return %c0_i32, %c0_i32_0 : i32, i32
  }
  func.func @transform_3(%arg0: i32) -> (i32, i32) {
    %c0_i32 = arith.constant 0 : i32
    %c0_i32_0 = arith.constant 0 : i32
    %c0_i32_1 = arith.constant 0 : i32
    return %c0_i32, %c0_i32_0 : i32, i32
  }
  func.func @transform_4(%arg0: i32) -> (i32, i32) {
    %c0_i32 = arith.constant 0 : i32
    %c0_i32_0 = arith.constant 0 : i32
    %c0_i32_1 = arith.constant 0 : i32
    return %c0_i32, %c0_i32_0 : i32, i32
  }
  func.func @transform_5(%arg0: i32) -> (i32, i32) {
    %c0_i32 = arith.constant 0 : i32
    %c0_i32_0 = arith.constant 0 : i32
    %c0_i32_1 = arith.constant 0 : i32
    return %c0_i32, %c0_i32_0 : i32, i32
  }
  func.func @transform_6(%arg0: i32) -> (i32, i32) {
    %c0_i32 = arith.constant 0 : i32
    %c0_i32_0 = arith.constant 0 : i32
    %c0_i32_1 = arith.constant 0 : i32
    return %c0_i32, %c0_i32_0 : i32, i32
  }
  func.func @transform_7(%arg0: i32) -> (i32, i32) {
    %c0_i32 = arith.constant 0 : i32
    %c0_i32_0 = arith.constant 0 : i32
    return %arg0, %c0_i32 : i32, i32
  }
  func.func @transform_8(%arg0: i32) -> (i32, i32) {
    %c0_i32 = arith.constant 0 : i32
    %c0_i32_0 = arith.constant 0 : i32
    return %arg0, %c0_i32 : i32, i32
  }
}

</mosaic_0001>

<bundles_post_ra>
// kernel: tpu_custom_call.1
= control target key start
LH: loop header
LB: loop body
LE: loop exit
PB: predicated region body
PF: predicated region fallthrough
CT: control target
= control target key end

     0   :  { %14 = vsyncpa [#allocation3], 0  ;;  %s814_s0 = inlined_call_operand.vmem [shape: f32[8,32], index: 0, kind: input, shape index: {}]   ;;  %s815_s1 = inlined_call_operand.vmem [shape: f32[8,96], index: 1, kind: input, shape index: {}]   ;;  %s816_s2 = inlined_call_operand.hbm [shape: f32[32,32], index: 2, kind: input, shape index: {}]   ;;  %s817_s3 = inlined_call_operand.vmem [shape: f32[96,32], index: 3, kind: input, shape index: {}]   ;;  %s818_s4 = inlined_call_operand.vmem [shape: f32[1,32], index: 4, kind: input, shape index: {}]   ;;  %s819_s5 = inlined_call_operand.vmem [shape: f32[32,512], index: 5, kind: input, shape index: {}]   ;;  %s820_s6 = inlined_call_operand.vmem [shape: f32[1,512], index: 6, kind: input, shape index: {}]   ;;  %s821_s7 = inlined_call_operand.hbm [shape: f32[8,32], index: 7, kind: output, shape index: {0}]   ;;  %s822_s8 = inlined_call_operand.hbm [shape: f32[8,512], index: 8, kind: output, shape index: {1}]  }
   0x1   :  { %15 = vsyncpa [#allocation4], 0 }
   0x2   :  { %16 = vsyncpa [#allocation7], 0  ;;  %s613_s27 = smov [#allocation2]   ;;  %s541_s9 = scalar_lea.hbm %s816_s2, 512 }
   0x3   :  { %s26_s28 = sshll.u32 %s613_s27, 4  ;;  %p542_p0 = scmp.ne.s32.totalorder %s816_s2, %s541_s9  ;;  %s27_s28 = int_to_ptr.vmem [resolvable:$true] %s26_s28 }
   0x4   :  { %p545_p1 = scmp.lt.u32.totalorder %s541_s9, %s816_s2 }
   0x6   :  { %p547_p2 = pnand %p545_p1, %p542_p0 }
   0x8   :  { %550 = shalt.err (!%p547_p2)
}
   0x9   :  { %s551_s14 = scalar_lea.vmem %s27_s28, 512  ;;  %p556_p4 = scmp.lt.s32.totalorder %s27_s28, %s27_s28 }
   0xa   :  { %p552_p3 = scmp.ne.s32.totalorder %s27_s28, %s551_s14  ;;  %p557_p5 = scmp.lt.s32.totalorder %s551_s14, %s551_s14 }
   0xc   :  { %p558_p6 = por %p557_p5, %p556_p4 }
   0xe   :  { %p559_p7 = pnand %p558_p6, %p552_p3 }
  0x10   :  { %562 = shalt.err (!%p559_p7)
}
  0x11   :  { %s614_s15 = smov 128   ;;  %s615_s16 = smov 8  }
  0x12   :  { %32 = dma.hbm_to_vmem [thread:$0]  %s816_s2, 512, %s27_s28, [#allocation3], %s614_s15, %s614_s15, %s615_s16  }
  0x13   :  { %607 = dma.done.wait [#allocation3], 512  }
  0x14   :  { %608 = vsyncadd [#allocation3], 4294966784  ;;  %v616_v0 = vmov 0.0|0.0   ;;  %vm617_vm0 = vmmov 0   ;;  %v618_v1 = vmov 0.0   ;;  %v50_v2 = vld [vmem:[%s817_s3] sm:$0xff]  ;;  %v236_v52 = vlaneseq }
  0x15   :  { %493 = vmatprep.subr.bf16.mxu0 %v616_v0  ;;  %511 = vmatprep.subr.bf16.mxu1 %v616_v0  ;;  %v51_v3 = vld [vmem:[%s817_s3 + $0x8] sm:$0xff]  ;;  %v46_v4 = vld [vmem:[#allocation2] sm:$0xff]  ;;  %v52_v7 = vld [vmem:[%s817_s3 + $0x10] sm:$0xff]  ;;  %vm136_vm1 = vcmask 261120   ;;  %vm62_vm2 = vcmask 785408   ;;  %s619_s9 = smov [#allocation5]  }
  0x16   :  { %490 = vmatprep.mubr.msk.f32.mxu1 %vm617_vm0, %v618_v1  ;;  %479 = vmatprep.mubr.msk.f32.mxu0 %vm617_vm0, %v618_v1  ;;  %v494_v5 = vpack.c.bf16 %v51_v3, %v50_v2  ;;  %v47_v6 = vld [vmem:[#allocation2 + $0x8] sm:$0xff]  ;;  %v53_v8 = vld [vmem:[%s817_s3 + $0x18] sm:$0xff]  ;;  %v48_v10 = vld [vmem:[#allocation2 + $0x10] sm:$0xff]  ;;  %v237_v53 = vshrl.u32 %v236_v52, 7  ;;  %s620_s10 = smov [#allocation6]  }
  0x17   :  { %v512_v9 = vpack.c.bf16 %v47_v6, %v46_v4  ;;  %v49_v11 = vld [vmem:[#allocation2 + $0x18] sm:$0xff]  ;;  %v219_v12 = vld [vmem:[%s819_s5 + $0x8] sm:$0xff]  ;;  %v497_v13 = vpack.c.bf16 %v53_v8, %v52_v7  ;;  %v54_v16 = vld [vmem:[%s817_s3 + $0x20] sm:$0xff]  ;;  %s419_s11 = sshll.u32 %s620_s10, 4  ;;  %s420_s11 = int_to_ptr.vmem [resolvable:$true] %s419_s11 }
  0x18   :  { %495 = vmatpush3.bf16.msra.mxu0 %v494_v5  ;;  %v223_v14 = vld [vmem:[%s819_s5 + $0x28] sm:$0xff]  ;;  %v515_v15 = vpack.c.bf16 %v49_v11, %v48_v10  ;;  %v218_v19 = vld [vmem:[%s819_s5] sm:$0xff]  ;;  %v56_v26 = vld [vmem:[%s817_s3 + $0x30] sm:$0xff]  ;;  %v238_v56 = vsub.s32 0, %v237_v53  ;;  %v242_v58 = vsub.s32 1, %v237_v53  ;;  %v250_v2 = vsub.s32 3, %v237_v53 }
  0x19   :  { %513 = vmatpush3.bf16.msra.mxu1 %v512_v9  ;;  %496 = vmatprep.subr.bf16.mxu0 %v616_v0  ;;  %v55_v17 = vld [vmem:[%s817_s3 + $0x28] sm:$0xff]  ;;  %v517_v18 = vpack.c.bf16 %v223_v14, %v219_v12  ;;  %v222_v20 = vld [vmem:[%s819_s5 + $0x20] sm:$0xff]  ;;  %v57_v27 = vld [vmem:[%s817_s3 + $0x38] sm:$0xff] }
  0x1a   :  { %514 = vmatprep.subr.bf16.mxu1 %v616_v0  ;;  %v227_v21 = vld [vmem:[%s819_s5 + $0x48] sm:$0xff]  ;;  %v500_v23 = vpack.c.bf16 %v55_v17, %v54_v16  ;;  %v44_v24 = vld [vmem:[%s814_s0] sm:$0xff]  ;;  %v519_v25 = vpack.c.bf16 %v222_v20, %v218_v19  ;;  %v221_v31 = vld [vmem:[%s819_s5 + $0x18] sm:$0xff]  ;;  %v503_v33 = vpack.c.bf16 %v57_v27, %v56_v26 }
  0x1b   :  { %v231_v22 = vld [vmem:[%s819_s5 + $0x68] sm:$0xff]  ;;  %v226_v29 = vld [vmem:[%s819_s5 + $0x40] sm:$0xff]  ;;  %v225_v32 = vld [vmem:[%s819_s5 + $0x38] sm:$0xff] }
  0x1c   :  { %498 = vmatpush3.bf16.msra.mxu0 %v497_v13  ;;  %v521_v28 = vpack.c.bf16 %v231_v22, %v227_v21  ;;  %v230_v30 = vld [vmem:[%s819_s5 + $0x60] sm:$0xff]  ;;  %v59_v36 = vld [vmem:[%s817_s3 + $0x48] sm:$0xff]  ;;  %v525_v37 = vpack.c.bf16 %v225_v32, %v221_v31  ;;  %v220_v38 = vld [vmem:[%s819_s5 + $0x10] sm:$0xff] }
  0x1d   :  { %516 = vmatpush3.bf16.msra.mxu1 %v515_v15  ;;  %499 = vmatprep.subr.bf16.mxu0 %v616_v0  ;;  %v523_v34 = vpack.c.bf16 %v230_v30, %v226_v29  ;;  %v58_v35 = vld [vmem:[%s817_s3 + $0x40] sm:$0xff]  ;;  %v224_v39 = vld [vmem:[%s819_s5 + $0x30] sm:$0xff]  ;;  %v229_v40 = vld [vmem:[%s819_s5 + $0x58] sm:$0xff] }
  0x1e   :  { %518 = vmatprep.subr.bf16.mxu1 %v517_v18  ;;  %v233_v41 = vld [vmem:[%s819_s5 + $0x78] sm:$0xff]  ;;  %v506_v42 = vpack.c.bf16 %v59_v36, %v58_v35  ;;  %v527_v43 = vpack.c.bf16 %v224_v39, %v220_v38  ;;  %v60_v44 = vld [vmem:[%s817_s3 + $0x50] sm:$0xff]  ;;  %v45_v51 = vld [vmem:[%s815_s1] sm:$0xff] }
  0x1f   :  { %v61_v45 = vld [vmem:[%s817_s3 + $0x58] sm:$0xff]  ;;  %v529_v46 = vpack.c.bf16 %v233_v41, %v229_v40  ;;  %v228_v47 = vld [vmem:[%s819_s5 + $0x50] sm:$0xff]  ;;  %v234_v57 = vld [vmem:[%s820_s6] sm:$0xf]  ;;  %s409_s6 = sshll.u32 %s619_s9, 4  ;;  %s410_s6 = int_to_ptr.vmem [resolvable:$true] %s409_s6 }
  0x20   :  { %501 = vmatpush3.bf16.msra.mxu0 %v500_v23  ;;  %491 = vmatmul.mubr.msk.f32.vlgmr.msra.gmra.mrb[0].mxu1 %vm136_vm1, %v44_v24  ;;  %v232_v48 = vld [vmem:[%s819_s5 + $0x70] sm:$0xff]  ;;  %v509_v49 = vpack.c.bf16 %v61_v45, %v60_v44  ;;  %v239_v59 = vrot.slane %v234_v57, %v238_v56  ;;  %v243_v60 = vrot.slane %v234_v57, %v242_v58  ;;  %v434_v6 = vld [vmem:[%s818_s4] ss:$0 sm:$0xff]  ;;  %s563_s12 = scalar_lea.vmem %s410_s6, 128  ;;  %p568_p9 = scmp.lt.s32.totalorder %s410_s6, %s410_s6 }
  0x21   :  { %520 = vmatpush1.bf16.msra.mxu1 %v519_v25  ;;  %502 = vmatprep.subr.bf16.mxu0 %v616_v0  ;;  %v531_v50 = vpack.c.bf16 %v232_v48, %v228_v47  ;;  %v251_v4 = vrot.slane %v234_v57, %v250_v2  ;;  %p564_p8 = scmp.ne.s32.totalorder %s410_s6, %s563_s12  ;;  %p569_p10 = scmp.lt.s32.totalorder %s563_s12, %s563_s12 }
  0x22   :  { %522 = vmatprep.subr.bf16.mxu1 %v521_v28  ;;  %320 = vmatprep.mubr.f32.mxu1 %v618_v1 }
  0x23   :  { %p570_p11 = por %p569_p10, %p568_p9 }
  0x24   :  { %504 = vmatpush3.bf16.msra.mxu0 %v503_v33 }
  0x25   :  { %524 = vmatpush1.bf16.msra.mxu1 %v523_v34  ;;  %505 = vmatprep.subr.bf16.mxu0 %v616_v0  ;;  %p571_p12 = pnand %p570_p11, %p564_p8 }
  0x26   :  { %526 = vmatprep.subr.bf16.mxu1 %v525_v37 }
  0x28   :  { %507 = vmatpush3.bf16.msra.mxu0 %v506_v42  ;;  %435 = vmatmul.mubr.msk.f32.vlgmr.msra.gmra.mrb[2].mxu1 %vm136_vm1, %v44_v24 }
  0x29   :  { %528 = vmatpush1.bf16.msra.mxu1 %v527_v43  ;;  %508 = vmatprep.subr.bf16.mxu0 %v616_v0  ;;  %v246_v0 = vsub.s32 2, %v237_v53 }
  0x2a   :  { %530 = vmatprep.subr.bf16.mxu1 %v529_v46  ;;  %391 = vmatprep.mubr.f32.mxu1 %v618_v1 }
  0x2b   :  { %v247_v3 = vrot.slane %v234_v57, %v246_v0 }
  0x2c   :  { %510 = vmatpush3.bf16.msra.mxu0 %v509_v49 }
  0x2d   :  { %532 = vmatpush1.bf16.msra.mxu1 %v531_v50 }
  0x2f   :  { %480 = vmatmul.mubr.msk.f32.vlgmr.msra.gmra.mrb[0].mxu0 %vm62_vm2, %v45_v51 }
  0x30   :  { %436 = vmatmul.mubr.msk.f32.vlgmr.msra.gmra.mrb[4].mxu1 %vm136_vm1, %v44_v24 }
  0xf3   :  { %v206_v54 = vpop.f32.mrb[0].mxu1 }
  0xf4   :  { %v492_v55 = vpop.f32.mrb[1].mxu1 }
  0xfb   :  { %v322_v61 = vpop.f32.mrb[2].mxu1 }
  0xfc   :  { %v323_v62 = vadd.f32 %v322_v61, %v239_v59  ;;  %v324_v63 = vpop.f32.mrb[3].mxu1 }
  0xfd   :  { %v325_v1 = vadd.f32 %v324_v63, %v243_v60 }
  0xfe   :  { %399 = vst [vmem:[#allocation6] sm:$0xff] %v323_v62 }
  0xff   :  { %400 = vst [vmem:[#allocation6 + $0x8] sm:$0xff] %v325_v1 }
 0x102   :  { %v132_v5 = vpop.f32.mrb[0].mxu0 }
 0x103   :  { %v207_v7 = vadd.f32 %v206_v54, %v132_v5  ;;  %v393_v8 = vpop.f32.mrb[4].mxu1  ;;  %v481_v9 = vpop.f32.mrb[1].mxu0 }
 0x104   :  { %v394_v10 = vadd.f32 %v393_v8, %v247_v3  ;;  %v395_v11 = vpop.f32.mrb[5].mxu1 }
 0x105   :  { %v217_v12 = vadd.f32 %v434_v6, %v207_v7  ;;  %v396_v13 = vadd.f32 %v395_v11, %v251_v4 }
 0x106   :  { %401 = vst [vmem:[#allocation6 + $0x10] sm:$0xff] %v394_v10 }
 0x107   :  { %398 = vst.msk [vmem:[#allocation5] sm:$0xff] %vm136_vm1, %v217_v12  ;;  %402 = vst [vmem:[#allocation6 + $0x18] sm:$0xff] %v396_v13 }
 0x108   :  { %574 = shalt.err (!%p571_p12)
}
 0x109   :  { %s575_s14 = scalar_lea.hbm %s821_s7, 128 }
 0x10a   :  { %p576_p13 = scmp.ne.s32.totalorder %s821_s7, %s575_s14  ;;  %p579_p0 = scmp.lt.u32.totalorder %s575_s14, %s821_s7 }
 0x10c   :  { %p581_p1 = pnand %p579_p0, %p576_p13 }
 0x10e   :  { %584 = shalt.err (!%p581_p1)
}
 0x10f   :  { %412 = dma.vmem_to_hbm [thread:$0]  %s410_s6, 128, %s821_s7, [#allocation4]  }
 0x110   :  { %s585_s21 = scalar_lea.vmem %s420_s11, 512  ;;  %p590_p3 = scmp.lt.s32.totalorder %s420_s11, %s420_s11 }
 0x111   :  { %p586_p2 = scmp.ne.s32.totalorder %s420_s11, %s585_s21  ;;  %p591_p4 = scmp.lt.s32.totalorder %s585_s21, %s585_s21 }
 0x113   :  { %p592_p5 = por %p591_p4, %p590_p3 }
 0x115   :  { %p593_p6 = pnand %p592_p5, %p586_p2 }
 0x117   :  { %596 = shalt.err (!%p593_p6)
}
 0x118   :  { %s597_s23 = scalar_lea.hbm %s822_s8, 512 }
 0x119   :  { %p598_p7 = scmp.ne.s32.totalorder %s822_s8, %s597_s23  ;;  %p601_p8 = scmp.lt.u32.totalorder %s597_s23, %s822_s8 }
 0x11b   :  { %p603_p9 = pnand %p601_p8, %p598_p7 }
 0x11d   :  { %606 = shalt.err (!%p603_p9)
}
 0x11e   :  { %422 = dma.vmem_to_hbm [thread:$0]  %s420_s11, 512, %s822_s8, [#allocation7]  }
 0x11f   :  { %609 = dma.done.wait [#allocation4], 128  }
 0x120   :  { %610 = vsyncadd [#allocation4], 4294967168 }
 0x121   :  { %611 = dma.done.wait [#allocation7], 512  }
 0x122   :  { %612 = vsyncadd [#allocation7], 4294966784 }
 0x123   :  { %429 = vsyncpa [#allocation3], 1 }
 0x124   :  { %430 = vsyncpa [#allocation4], 1 }
 0x125   :  { %431 = vsyncpa [#allocation7], 1 }

</bundles_post_ra>
